<compile_context>
chip_gen: v6e
topology: v6e:2x2x1
jax: 0.10.0
libtpu: 0.0.40
codegen_flags: <defaults>
</compile_context>

<pallas_src>
import functools

import jax
import jax.numpy as jnp
from jax import lax
from jax.experimental import pallas as pl
from jax.experimental.pallas import tpu as pltpu

LANE = 128


def _conv3x3_stats_kernel(x_ref, w_ref, y_ref, ssum_ref, ssq_ref, *, stride):
    # x_ref:    (H+2, W+2, Cin)  zero-padded input image (one image per grid step)
    # w_ref:    (3, 3, Cin, Cp)  HWIO weights, Cout zero-padded to Cp (lane-dense)
    # y_ref:    (Ho, W, Cp)      stride-1 columns of the needed output rows
    # ssum_ref: (1, Cp)          per-image channel sum   (over the strided output)
    # ssq_ref:  (1, Cp)          per-image channel sum^2 (over the strided output)
    Ho, W, Cp = y_ref.shape

    # Hoist the 9 (Cin, Cp) weight taps into registers once.
    w_taps = [[w_ref[kh, kw] for kw in range(3)] for kh in range(3)]

    # Column mask for the fused BN statistics when stride > 1 (only columns that
    # survive the stride belong to the real output).
    if stride > 1:
        keep_col = (lax.broadcasted_iota(jnp.int32, (W, Cp), 0) % stride) == 0
    else:
        keep_col = None

    ssum_ref[...] = jnp.zeros((1, Cp), jnp.float32)
    ssq_ref[...] = jnp.zeros((1, Cp), jnp.float32)

    @pl.loop(0, Ho)
    def _(ho):
        r0 = ho * stride                              # row stride handled here
        acc = jnp.zeros((W, Cp), jnp.float32)         # small per-row accumulator
        for kh in range(3):                           # static 3x3 tap loop
            row = x_ref[r0 + kh]                      # (W+2, Cin)
            for kw in range(3):
                acc = acc + jnp.dot(row[kw:kw + W, :], w_taps[kh][kw],
                                    preferred_element_type=jnp.float32)
        y_ref[ho] = acc

        # Fused BatchNorm statistics (on the VMEM-resident row, no extra HBM read).
        stat = acc if keep_col is None else jnp.where(keep_col, acc, 0.0)
        ssum_ref[...] += jnp.sum(stat, axis=0, keepdims=True)
        ssq_ref[...] += jnp.sum(stat * stat, axis=0, keepdims=True)


def _bn_leakyrelu_kernel(y_ref, scale_ref, shift_ref, o_ref, *, negative_slope):
    # y_ref: (TR, Cp) tile of the conv output; scale/shift: (1, Cp) folded BN affine.
    out = y_ref[...] * scale_ref[...] + shift_ref[...]
    o_ref[...] = jnp.where(out >= 0.0, out, negative_slope * out)


def _row_tile(rows, target=256):
    for cand in (target, 128, 64, 32, 16, 8):
        if cand <= rows and rows % cand == 0:
            return cand
    return rows


@functools.partial(jax.jit, static_argnames=("stride", "eps", "negative_slope"))
def conv_bn_relu(x_nchw, weight_oihw, bias, gamma, beta, stride=1,
                 eps=1e-5, negative_slope=0.01):
    """Forward pass of ConvBNReLU.  Inputs/outputs are NCHW float32."""
    del bias  # Conv bias cancels exactly under training-mode BatchNorm.

    N, Cin, H, W = x_nchw.shape
    Cout = weight_oihw.shape[0]
    s = int(stride)
    Ho = (H - 1) // s + 1
    Wo = (W - 1) // s + 1
    Cp = ((Cout + LANE - 1) // LANE) * LANE           # lane-dense channel padding

    x = jnp.transpose(x_nchw.astype(jnp.float32), (0, 2, 3, 1))       # NHWC
    # padding=1, done once on the smallest tensor.
    # TODO(synk): fold this halo padding into the conv kernel (VMEM scratch) to
    # save this extra HBM pass over the input.
    x_pad = jnp.pad(x, ((0, 0), (1, 1), (1, 1), (0, 0)))

    # OIHW -> (kh, kw, Cin, Cout) -> zero-pad Cout to Cp.
    w = jnp.transpose(weight_oihw.astype(jnp.float32), (2, 3, 1, 0))
    w = jnp.pad(w, ((0, 0), (0, 0), (0, 0), (0, Cp - Cout)))

    Hp, Wp = H + 2, W + 2
    conv_out, ssum, ssq = pl.pallas_call(
        functools.partial(_conv3x3_stats_kernel, stride=s),
        out_shape=(
            jax.ShapeDtypeStruct((N, Ho, W, Cp), jnp.float32),
            jax.ShapeDtypeStruct((N, 1, Cp), jnp.float32),
            jax.ShapeDtypeStruct((N, 1, Cp), jnp.float32),
        ),
        grid=(N,),
        in_specs=[
            pl.BlockSpec((None, Hp, Wp, Cin), lambda n: (n, 0, 0, 0)),
            pl.BlockSpec((3, 3, Cin, Cp), lambda n: (0, 0, 0, 0)),
        ],
        out_specs=(
            pl.BlockSpec((None, Ho, W, Cp), lambda n: (n, 0, 0, 0)),
            pl.BlockSpec((None, 1, Cp), lambda n: (n, 0, 0)),
            pl.BlockSpec((None, 1, Cp), lambda n: (n, 0, 0)),
        ),
        compiler_params=pltpu.CompilerParams(dimension_semantics=("parallel",)),
    )(x_pad, w)

    # Tiny cross-image reduction of the fused statistics; fold BN (training-mode,
    # biased variance, eps=1e-5) into one per-channel scale/shift.
    count = jnp.float32(N * Ho * Wo)
    mean = jnp.sum(ssum, axis=0) / count                               # (1, Cp)
    var = jnp.maximum(jnp.sum(ssq, axis=0) / count - mean * mean, 0.0)
    inv = lax.rsqrt(var + eps)
    gamma_p = jnp.pad(gamma.astype(jnp.float32), (0, Cp - Cout)).reshape(1, Cp)
    beta_p = jnp.pad(beta.astype(jnp.float32), (0, Cp - Cout)).reshape(1, Cp)
    scale = gamma_p * inv
    shift = beta_p - mean * scale

    # Drop the columns that the stride discards *before* normalization so the
    # streaming kernel only touches real output data.
    # TODO(synk): emit only the strided columns from the conv kernel itself to
    # also skip their matmul work (currently s x column waste for stride > 1).
    if s > 1:
        conv_out = conv_out[:, :, ::s, :]             # (N, Ho, Wo, Cp)

    # Streaming, tiled normalize + LeakyReLU over the lane-dense activation,
    # written in place over the conv output buffer (input_output_aliases).
    R = N * Ho * Wo
    y2d = conv_out.reshape(R, Cp)
    TR = _row_tile(R)
    out2d = pl.pallas_call(
        functools.partial(_bn_leakyrelu_kernel, negative_slope=negative_slope),
        out_shape=jax.ShapeDtypeStruct((R, Cp), jnp.float32),
        grid=(R // TR,),
        in_specs=[
            pl.BlockSpec((TR, Cp), lambda i: (i, 0)),
            pl.BlockSpec((1, Cp), lambda i: (0, 0)),
            pl.BlockSpec((1, Cp), lambda i: (0, 0)),
        ],
        out_specs=pl.BlockSpec((TR, Cp), lambda i: (i, 0)),
        input_output_aliases={0: 0},
        compiler_params=pltpu.CompilerParams(dimension_semantics=("parallel",)),
    )(y2d, scale, shift)

    out = out2d.reshape(N, Ho, Wo, Cp)
    out = out[:, :, :, :Cout]            # drop channel padding
    return jnp.transpose(out, (0, 3, 1, 2))                           # NCHW


def _reference(x, w, b, gamma, beta, stride):
    """Pure-JAX reference for the same forward pass (NCHW, with conv bias)."""
    y = lax.conv_general_dilated(
        x, w, window_strides=(stride, stride), padding=((1, 1), (1, 1)),
        dimension_numbers=("NCHW", "OIHW", "NCHW"))
    y = y + b[None, :, None, None]
    mean = jnp.mean(y, axis=(0, 2, 3), keepdims=True)
    var = jnp.mean(jnp.square(y - mean), axis=(0, 2, 3), keepdims=True)
    yh = (y - mean) * lax.rsqrt(var + 1e-5)
    out = yh * gamma[None, :, None, None] + beta[None, :, None, None]
    return jnp.where(out >= 0, out, 0.01 * out)


if __name__ == "__main__":
    # Small shapes consistent with the module: nin=4, nout=8.
    N, Cin, Cout, H, W = 2, 4, 8, 16, 16

    key = jax.random.PRNGKey(0)
    kx, kw_, kb, kg, kbeta = jax.random.split(key, 5)

    x = jax.random.normal(kx, (N, Cin, H, W), dtype=jnp.float32)
    weight = 0.1 * jax.random.normal(kw_, (Cout, Cin, 3, 3), dtype=jnp.float32)
    bias = 0.1 * jax.random.normal(kb, (Cout,), dtype=jnp.float32)
    gamma = 1.0 + 0.1 * jax.random.normal(kg, (Cout,), dtype=jnp.float32)
    beta = 0.1 * jax.random.normal(kbeta, (Cout,), dtype=jnp.float32)

    for stride in (1, 2):
        out = jax.block_until_ready(
            conv_bn_relu(x, weight, bias, gamma, beta, stride=stride))
        ref = jax.block_until_ready(
            _reference(x, weight, bias, gamma, beta, stride))
        assert out.shape == ref.shape, (out.shape, ref.shape)
        max_err = float(jnp.max(jnp.abs(out - ref)))
        if max_err > 2e-3:
            raise AssertionError(
                f"stride={stride}: mismatch vs reference, max abs err = {max_err}")

    print("KERNEL_OK")
</pallas_src>

<mosaic_0001>
module attributes {stable_mosaic.version = 11 : i64} {
  func.func @_conv3x3_stats_kernel(%arg0: i32, %arg1: memref<1x18x18x4xf32, #tpu.memory_space<vmem>>, %arg2: memref<3x3x4x128xf32, #tpu.memory_space<vmem>>, %arg3: memref<1x16x16x128xf32, #tpu.memory_space<vmem>>, %arg4: memref<1x1x128xf32, #tpu.memory_space<vmem>>, %arg5: memref<1x1x128xf32, #tpu.memory_space<vmem>>) attributes {dimension_semantics = [#tpu.dimension_semantics<parallel>], iteration_bounds = array<i64: 2>, scalar_prefetch = 0 : i64, scratch_operands = 0 : i64, tpu.core_type = #tpu.core_type<tc>, window_params = [{transform_indices = @transform_0, window_bounds = array<i64: 1, 18, 18, 4>}, {pipeline_mode = #tpu.pipeline_mode<synchronous>, transform_indices = @transform_1, window_bounds = array<i64: 3, 3, 4, 128>}, {transform_indices = @transform_2, window_bounds = array<i64: 1, 16, 16, 128>}, {transform_indices = @transform_3, window_bounds = array<i64: 1, 1, 128>}, {transform_indices = @transform_4, window_bounds = array<i64: 1, 1, 128>}]} {
    %c0 = arith.constant 0 : index
    %c0_0 = arith.constant 0 : index
    %c0_1 = arith.constant 0 : index
    %c0_2 = arith.constant 0 : index
    %0 = vector.load %arg2[%c0, %c0_0, %c0_1, %c0_2] : memref<3x3x4x128xf32, #tpu.memory_space<vmem>>, vector<1x1x4x128xf32>
    %1 = vector.shape_cast %0 : vector<1x1x4x128xf32> to vector<4x128xf32>
    %c0_3 = arith.constant 0 : index
    %c1 = arith.constant 1 : index
    %c0_4 = arith.constant 0 : index
    %c0_5 = arith.constant 0 : index
    %2 = vector.load %arg2[%c0_3, %c1, %c0_4, %c0_5] : memref<3x3x4x128xf32, #tpu.memory_space<vmem>>, vector<1x1x4x128xf32>
    %3 = vector.shape_cast %2 : vector<1x1x4x128xf32> to vector<4x128xf32>
    %c0_6 = arith.constant 0 : index
    %c2 = arith.constant 2 : index
    %c0_7 = arith.constant 0 : index
    %c0_8 = arith.constant 0 : index
    %4 = vector.load %arg2[%c0_6, %c2, %c0_7, %c0_8] : memref<3x3x4x128xf32, #tpu.memory_space<vmem>>, vector<1x1x4x128xf32>
    %5 = vector.shape_cast %4 : vector<1x1x4x128xf32> to vector<4x128xf32>
    %c1_9 = arith.constant 1 : index
    %c0_10 = arith.constant 0 : index
    %c0_11 = arith.constant 0 : index
    %c0_12 = arith.constant 0 : index
    %6 = vector.load %arg2[%c1_9, %c0_10, %c0_11, %c0_12] : memref<3x3x4x128xf32, #tpu.memory_space<vmem>>, vector<1x1x4x128xf32>
    %7 = vector.shape_cast %6 : vector<1x1x4x128xf32> to vector<4x128xf32>
    %c1_13 = arith.constant 1 : index
    %c1_14 = arith.constant 1 : index
    %c0_15 = arith.constant 0 : index
    %c0_16 = arith.constant 0 : index
    %8 = vector.load %arg2[%c1_13, %c1_14, %c0_15, %c0_16] : memref<3x3x4x128xf32, #tpu.memory_space<vmem>>, vector<1x1x4x128xf32>
    %9 = vector.shape_cast %8 : vector<1x1x4x128xf32> to vector<4x128xf32>
    %c1_17 = arith.constant 1 : index
    %c2_18 = arith.constant 2 : index
    %c0_19 = arith.constant 0 : index
    %c0_20 = arith.constant 0 : index
    %10 = vector.load %arg2[%c1_17, %c2_18, %c0_19, %c0_20] : memref<3x3x4x128xf32, #tpu.memory_space<vmem>>, vector<1x1x4x128xf32>
    %11 = vector.shape_cast %10 : vector<1x1x4x128xf32> to vector<4x128xf32>
    %c2_21 = arith.constant 2 : index
    %c0_22 = arith.constant 0 : index
    %c0_23 = arith.constant 0 : index
    %c0_24 = arith.constant 0 : index
    %12 = vector.load %arg2[%c2_21, %c0_22, %c0_23, %c0_24] : memref<3x3x4x128xf32, #tpu.memory_space<vmem>>, vector<1x1x4x128xf32>
    %13 = vector.shape_cast %12 : vector<1x1x4x128xf32> to vector<4x128xf32>
    %c2_25 = arith.constant 2 : index
    %c1_26 = arith.constant 1 : index
    %c0_27 = arith.constant 0 : index
    %c0_28 = arith.constant 0 : index
    %14 = vector.load %arg2[%c2_25, %c1_26, %c0_27, %c0_28] : memref<3x3x4x128xf32, #tpu.memory_space<vmem>>, vector<1x1x4x128xf32>
    %15 = vector.shape_cast %14 : vector<1x1x4x128xf32> to vector<4x128xf32>
    %c2_29 = arith.constant 2 : index
    %c2_30 = arith.constant 2 : index
    %c0_31 = arith.constant 0 : index
    %c0_32 = arith.constant 0 : index
    %16 = vector.load %arg2[%c2_29, %c2_30, %c0_31, %c0_32] : memref<3x3x4x128xf32, #tpu.memory_space<vmem>>, vector<1x1x4x128xf32>
    %17 = vector.shape_cast %16 : vector<1x1x4x128xf32> to vector<4x128xf32>
    %cst = arith.constant 0.000000e+00 : f32
    %18 = vector.broadcast %cst : f32 to vector<1x128xf32>
    %c0_33 = arith.constant 0 : index
    %c0_34 = arith.constant 0 : index
    %c0_35 = arith.constant 0 : index
    %19 = vector.load %arg4[%c0_33, %c0_34, %c0_35] : memref<1x1x128xf32, #tpu.memory_space<vmem>>, vector<1x1x128xf32>
    %20 = vector.shape_cast %19 : vector<1x1x128xf32> to vector<1x128xf32>
    %21 = vector.shape_cast %18 : vector<1x128xf32> to vector<1x1x128xf32>
    tpu.vector_store %arg4[%c0_33, %c0_34, %c0_35], %21 {strides = array<i32>} : memref<1x1x128xf32, #tpu.memory_space<vmem>>, vector<1x1x128xf32>,
    %cst_36 = arith.constant 0.000000e+00 : f32
    %22 = vector.broadcast %cst_36 : f32 to vector<1x128xf32>
    %c0_37 = arith.constant 0 : index
    %c0_38 = arith.constant 0 : index
    %c0_39 = arith.constant 0 : index
    %23 = vector.load %arg5[%c0_37, %c0_38, %c0_39] : memref<1x1x128xf32, #tpu.memory_space<vmem>>, vector<1x1x128xf32>
    %24 = vector.shape_cast %23 : vector<1x1x128xf32> to vector<1x128xf32>
    %25 = vector.shape_cast %22 : vector<1x128xf32> to vector<1x1x128xf32>
    tpu.vector_store %arg5[%c0_37, %c0_38, %c0_39], %25 {strides = array<i32>} : memref<1x1x128xf32, #tpu.memory_space<vmem>>, vector<1x1x128xf32>,
    %c0_i32 = arith.constant 0 : i32
    %c16_i32 = arith.constant 16 : i32
    %26 = arith.addi %c0_i32, %c16_i32 : i32
    %c1_i32 = arith.constant 1 : i32
    scf.for %arg6 = %c0_i32 to %26 step %c1_i32  : i32 {
      %c1_i32_41 = arith.constant 1 : i32
      %27 = arith.muli %arg6, %c1_i32_41 : i32
      %c0_i32_42 = arith.constant 0 : i32
      %28 = arith.addi %c0_i32_42, %27 : i32
      %c1_i32_43 = arith.constant 1 : i32
      %29 = arith.muli %28, %c1_i32_43 : i32
      %cst_44 = arith.constant 0.000000e+00 : f32
      %30 = vector.broadcast %cst_44 : f32 to vector<16x128xf32>
      %c0_i32_45 = arith.constant 0 : i32
      %31 = arith.addi %29, %c0_i32_45 : i32
      %c0_46 = arith.constant 0 : index
      %32 = arith.index_cast %31 : i32 to index
      %c0_47 = arith.constant 0 : index
      %c0_48 = arith.constant 0 : index
      %33 = vector.load %arg1[%c0_46, %32, %c0_47, %c0_48] : memref<1x18x18x4xf32, #tpu.memory_space<vmem>>, vector<1x1x18x4xf32>
      %34 = vector.shape_cast %33 : vector<1x1x18x4xf32> to vector<18x4xf32>
      %35 = vector.extract_strided_slice %34 {offsets = [0, 0], sizes = [16, 4], strides = [1, 1]} : vector<18x4xf32> to vector<16x4xf32>
      %cst_49 = arith.constant dense<0.000000e+00> : vector<16x128xf32>
      %36 = tpu.matmul %35, %1, %cst_49 {dimension_numbers = #tpu.dot_dimension_numbers<[1], [0], [0], [1], [0, 0, 1, 1], [], []>} : vector<16x4xf32>, vector<4x128xf32>, vector<16x128xf32> -> vector<16x128xf32>
      %37 = arith.addf %30, %36 : vector<16x128xf32>
      %38 = vector.extract_strided_slice %34 {offsets = [1, 0], sizes = [16, 4], strides = [1, 1]} : vector<18x4xf32> to vector<16x4xf32>
      %cst_50 = arith.constant dense<0.000000e+00> : vector<16x128xf32>
      %39 = tpu.matmul %38, %3, %cst_50 {dimension_numbers = #tpu.dot_dimension_numbers<[1], [0], [0], [1], [0, 0, 1, 1], [], []>} : vector<16x4xf32>, vector<4x128xf32>, vector<16x128xf32> -> vector<16x128xf32>
      %40 = arith.addf %37, %39 : vector<16x128xf32>
      %41 = vector.extract_strided_slice %34 {offsets = [2, 0], sizes = [16, 4], strides = [1, 1]} : vector<18x4xf32> to vector<16x4xf32>
      %cst_51 = arith.constant dense<0.000000e+00> : vector<16x128xf32>
      %42 = tpu.matmul %41, %5, %cst_51 {dimension_numbers = #tpu.dot_dimension_numbers<[1], [0], [0], [1], [0, 0, 1, 1], [], []>} : vector<16x4xf32>, vector<4x128xf32>, vector<16x128xf32> -> vector<16x128xf32>
      %43 = arith.addf %40, %42 : vector<16x128xf32>
      %c1_i32_52 = arith.constant 1 : i32
      %44 = arith.addi %29, %c1_i32_52 : i32
      %c0_53 = arith.constant 0 : index
      %45 = arith.index_cast %44 : i32 to index
      %c0_54 = arith.constant 0 : index
      %c0_55 = arith.constant 0 : index
      %46 = vector.load %arg1[%c0_53, %45, %c0_54, %c0_55] : memref<1x18x18x4xf32, #tpu.memory_space<vmem>>, vector<1x1x18x4xf32>
      %47 = vector.shape_cast %46 : vector<1x1x18x4xf32> to vector<18x4xf32>
      %48 = vector.extract_strided_slice %47 {offsets = [0, 0], sizes = [16, 4], strides = [1, 1]} : vector<18x4xf32> to vector<16x4xf32>
      %cst_56 = arith.constant dense<0.000000e+00> : vector<16x128xf32>
      %49 = tpu.matmul %48, %7, %cst_56 {dimension_numbers = #tpu.dot_dimension_numbers<[1], [0], [0], [1], [0, 0, 1, 1], [], []>} : vector<16x4xf32>, vector<4x128xf32>, vector<16x128xf32> -> vector<16x128xf32>
      %50 = arith.addf %43, %49 : vector<16x128xf32>
      %51 = vector.extract_strided_slice %47 {offsets = [1, 0], sizes = [16, 4], strides = [1, 1]} : vector<18x4xf32> to vector<16x4xf32>
      %cst_57 = arith.constant dense<0.000000e+00> : vector<16x128xf32>
      %52 = tpu.matmul %51, %9, %cst_57 {dimension_numbers = #tpu.dot_dimension_numbers<[1], [0], [0], [1], [0, 0, 1, 1], [], []>} : vector<16x4xf32>, vector<4x128xf32>, vector<16x128xf32> -> vector<16x128xf32>
      %53 = arith.addf %50, %52 : vector<16x128xf32>
      %54 = vector.extract_strided_slice %47 {offsets = [2, 0], sizes = [16, 4], strides = [1, 1]} : vector<18x4xf32> to vector<16x4xf32>
      %cst_58 = arith.constant dense<0.000000e+00> : vector<16x128xf32>
      %55 = tpu.matmul %54, %11, %cst_58 {dimension_numbers = #tpu.dot_dimension_numbers<[1], [0], [0], [1], [0, 0, 1, 1], [], []>} : vector<16x4xf32>, vector<4x128xf32>, vector<16x128xf32> -> vector<16x128xf32>
      %56 = arith.addf %53, %55 : vector<16x128xf32>
      %c2_i32 = arith.constant 2 : i32
      %57 = arith.addi %29, %c2_i32 : i32
      %c0_59 = arith.constant 0 : index
      %58 = arith.index_cast %57 : i32 to index
      %c0_60 = arith.constant 0 : index
      %c0_61 = arith.constant 0 : index
      %59 = vector.load %arg1[%c0_59, %58, %c0_60, %c0_61] : memref<1x18x18x4xf32, #tpu.memory_space<vmem>>, vector<1x1x18x4xf32>
      %60 = vector.shape_cast %59 : vector<1x1x18x4xf32> to vector<18x4xf32>
      %61 = vector.extract_strided_slice %60 {offsets = [0, 0], sizes = [16, 4], strides = [1, 1]} : vector<18x4xf32> to vector<16x4xf32>
      %cst_62 = arith.constant dense<0.000000e+00> : vector<16x128xf32>
      %62 = tpu.matmul %61, %13, %cst_62 {dimension_numbers = #tpu.dot_dimension_numbers<[1], [0], [0], [1], [0, 0, 1, 1], [], []>} : vector<16x4xf32>, vector<4x128xf32>, vector<16x128xf32> -> vector<16x128xf32>
      %63 = arith.addf %56, %62 : vector<16x128xf32>
      %64 = vector.extract_strided_slice %60 {offsets = [1, 0], sizes = [16, 4], strides = [1, 1]} : vector<18x4xf32> to vector<16x4xf32>
      %cst_63 = arith.constant dense<0.000000e+00> : vector<16x128xf32>
      %65 = tpu.matmul %64, %15, %cst_63 {dimension_numbers = #tpu.dot_dimension_numbers<[1], [0], [0], [1], [0, 0, 1, 1], [], []>} : vector<16x4xf32>, vector<4x128xf32>, vector<16x128xf32> -> vector<16x128xf32>
      %66 = arith.addf %63, %65 : vector<16x128xf32>
      %67 = vector.extract_strided_slice %60 {offsets = [2, 0], sizes = [16, 4], strides = [1, 1]} : vector<18x4xf32> to vector<16x4xf32>
      %cst_64 = arith.constant dense<0.000000e+00> : vector<16x128xf32>
      %68 = tpu.matmul %67, %17, %cst_64 {dimension_numbers = #tpu.dot_dimension_numbers<[1], [0], [0], [1], [0, 0, 1, 1], [], []>} : vector<16x4xf32>, vector<4x128xf32>, vector<16x128xf32> -> vector<16x128xf32>
      %69 = arith.addf %66, %68 : vector<16x128xf32>
      %c0_65 = arith.constant 0 : index
      %70 = arith.index_cast %28 : i32 to index
      %c0_66 = arith.constant 0 : index
      %c0_67 = arith.constant 0 : index
      %71 = vector.load %arg3[%c0_65, %70, %c0_66, %c0_67] : memref<1x16x16x128xf32, #tpu.memory_space<vmem>>, vector<1x1x16x128xf32>
      %72 = vector.shape_cast %71 : vector<1x1x16x128xf32> to vector<16x128xf32>
      %73 = vector.shape_cast %69 : vector<16x128xf32> to vector<1x1x16x128xf32>
      tpu.vector_store %arg3[%c0_65, %70, %c0_66, %c0_67], %73 {strides = array<i32>} : memref<1x16x16x128xf32, #tpu.memory_space<vmem>>, vector<1x1x16x128xf32>,
      %c0_68 = arith.constant 0 : index
      %c0_69 = arith.constant 0 : index
      %c0_70 = arith.constant 0 : index
      %74 = vector.load %arg4[%c0_68, %c0_69, %c0_70] : memref<1x1x128xf32, #tpu.memory_space<vmem>>, vector<1x1x128xf32>
      %75 = vector.shape_cast %74 : vector<1x1x128xf32> to vector<1x128xf32>
      %cst_71 = arith.constant dense<0.000000e+00> : vector<128xf32>
      %76 = vector.multi_reduction <add>, %69, %cst_71 [0] : vector<16x128xf32> to vector<128xf32>
      %77 = vector.shape_cast %76 : vector<128xf32> to vector<1x128xf32>
      %78 = arith.addf %75, %77 : vector<1x128xf32>
      %c0_72 = arith.constant 0 : index
      %c0_73 = arith.constant 0 : index
      %c0_74 = arith.constant 0 : index
      %79 = vector.load %arg4[%c0_72, %c0_73, %c0_74] : memref<1x1x128xf32, #tpu.memory_space<vmem>>, vector<1x1x128xf32>
      %80 = vector.shape_cast %79 : vector<1x1x128xf32> to vector<1x128xf32>
      %81 = vector.shape_cast %78 : vector<1x128xf32> to vector<1x1x128xf32>
      tpu.vector_store %arg4[%c0_72, %c0_73, %c0_74], %81 {strides = array<i32>} : memref<1x1x128xf32, #tpu.memory_space<vmem>>, vector<1x1x128xf32>,
      %c0_75 = arith.constant 0 : index
      %c0_76 = arith.constant 0 : index
      %c0_77 = arith.constant 0 : index
      %82 = vector.load %arg5[%c0_75, %c0_76, %c0_77] : memref<1x1x128xf32, #tpu.memory_space<vmem>>, vector<1x1x128xf32>
      %83 = vector.shape_cast %82 : vector<1x1x128xf32> to vector<1x128xf32>
      %84 = arith.mulf %69, %69 : vector<16x128xf32>
      %cst_78 = arith.constant dense<0.000000e+00> : vector<128xf32>
      %85 = vector.multi_reduction <add>, %84, %cst_78 [0] : vector<16x128xf32> to vector<128xf32>
      %86 = vector.shape_cast %85 : vector<128xf32> to vector<1x128xf32>
      %87 = arith.addf %83, %86 : vector<1x128xf32>
      %c0_79 = arith.constant 0 : index
      %c0_80 = arith.constant 0 : index
      %c0_81 = arith.constant 0 : index
      %88 = vector.load %arg5[%c0_79, %c0_80, %c0_81] : memref<1x1x128xf32, #tpu.memory_space<vmem>>, vector<1x1x128xf32>
      %89 = vector.shape_cast %88 : vector<1x1x128xf32> to vector<1x128xf32>
      %90 = vector.shape_cast %87 : vector<1x128xf32> to vector<1x1x128xf32>
      tpu.vector_store %arg5[%c0_79, %c0_80, %c0_81], %90 {strides = array<i32>} : memref<1x1x128xf32, #tpu.memory_space<vmem>>, vector<1x1x128xf32>,
    }
    %c16_i32_40 = arith.constant 16 : i32
    return
  }
  func.func @transform_0(%arg0: i32) -> (i32, i32, i32, i32) {
    %c0_i32 = arith.constant 0 : i32
    %c0_i32_0 = arith.constant 0 : i32
    %c0_i32_1 = arith.constant 0 : i32
    %c0_i32_2 = arith.constant 0 : i32
    return %arg0, %c0_i32, %c0_i32_0, %c0_i32_1 : i32, i32, i32, i32
  }
  func.func @transform_1(%arg0: i32) -> (i32, i32, i32, i32) {
    %c0_i32 = arith.constant 0 : i32
    %c0_i32_0 = arith.constant 0 : i32
    %c0_i32_1 = arith.constant 0 : i32
    %c0_i32_2 = arith.constant 0 : i32
    %c0_i32_3 = arith.constant 0 : i32
    return %c0_i32, %c0_i32_0, %c0_i32_1, %c0_i32_2 : i32, i32, i32, i32
  }
  func.func @transform_2(%arg0: i32) -> (i32, i32, i32, i32) {
    %c0_i32 = arith.constant 0 : i32
    %c0_i32_0 = arith.constant 0 : i32
    %c0_i32_1 = arith.constant 0 : i32
    %c0_i32_2 = arith.constant 0 : i32
    return %arg0, %c0_i32, %c0_i32_0, %c0_i32_1 : i32, i32, i32, i32
  }
  func.func @transform_3(%arg0: i32) -> (i32, i32, i32) {
    %c0_i32 = arith.constant 0 : i32
    %c0_i32_0 = arith.constant 0 : i32
    %c0_i32_1 = arith.constant 0 : i32
    return %arg0, %c0_i32, %c0_i32_0 : i32, i32, i32
  }
  func.func @transform_4(%arg0: i32) -> (i32, i32, i32) {
    %c0_i32 = arith.constant 0 : i32
    %c0_i32_0 = arith.constant 0 : i32
    %c0_i32_1 = arith.constant 0 : i32
    return %arg0, %c0_i32, %c0_i32_0 : i32, i32, i32
  }
}

module attributes {stable_mosaic.version = 11 : i64} {
  func.func @_bn_leakyrelu_kernel(%arg0: i32, %arg1: memref<256x128xf32, #tpu.memory_space<vmem>>, %arg2: memref<1x128xf32, #tpu.memory_space<vmem>>, %arg3: memref<1x128xf32, #tpu.memory_space<vmem>>, %arg4: memref<256x128xf32, #tpu.memory_space<vmem>>) attributes {dimension_semantics = [#tpu.dimension_semantics<parallel>], iteration_bounds = array<i64: 2>, scalar_prefetch = 0 : i64, scratch_operands = 0 : i64, tpu.core_type = #tpu.core_type<tc>, window_params = [{transform_indices = @transform_0, window_bounds = array<i64: 256, 128>}, {pipeline_mode = #tpu.pipeline_mode<synchronous>, transform_indices = @transform_1, window_bounds = array<i64: 1, 128>}, {pipeline_mode = #tpu.pipeline_mode<synchronous>, transform_indices = @transform_2, window_bounds = array<i64: 1, 128>}, {transform_indices = @transform_3, window_bounds = array<i64: 256, 128>}]} {
    %c0 = arith.constant 0 : index
    %c0_0 = arith.constant 0 : index
    %0 = vector.load %arg1[%c0, %c0_0] : memref<256x128xf32, #tpu.memory_space<vmem>>, vector<256x128xf32>
    %c0_1 = arith.constant 0 : index
    %c0_2 = arith.constant 0 : index
    %1 = vector.load %arg2[%c0_1, %c0_2] : memref<1x128xf32, #tpu.memory_space<vmem>>, vector<1x128xf32>
    %2 = vector.broadcast %1 : vector<1x128xf32> to vector<256x128xf32>
    %3 = arith.mulf %0, %2 : vector<256x128xf32>
    %c0_3 = arith.constant 0 : index
    %c0_4 = arith.constant 0 : index
    %4 = vector.load %arg3[%c0_3, %c0_4] : memref<1x128xf32, #tpu.memory_space<vmem>>, vector<1x128xf32>
    %5 = vector.broadcast %4 : vector<1x128xf32> to vector<256x128xf32>
    %6 = arith.addf %3, %5 : vector<256x128xf32>
    %cst = arith.constant 0.000000e+00 : f32
    %7 = vector.broadcast %cst : f32 to vector<256x128xf32>
    %8 = arith.cmpf oge, %6, %7 : vector<256x128xf32>
    %cst_5 = arith.constant 0.00999999977 : f32
    %9 = vector.broadcast %cst_5 : f32 to vector<256x128xf32>
    %10 = arith.mulf %9, %6 : vector<256x128xf32>
    %11 = arith.select %8, %6, %10 : vector<256x128xi1>, vector<256x128xf32>
    %c0_6 = arith.constant 0 : index
    %c0_7 = arith.constant 0 : index
    %12 = vector.load %arg4[%c0_6, %c0_7] : memref<256x128xf32, #tpu.memory_space<vmem>>, vector<256x128xf32>
    tpu.vector_store %arg4[%c0_6, %c0_7], %11 {strides = array<i32>} : memref<256x128xf32, #tpu.memory_space<vmem>>, vector<256x128xf32>,
    return
  }
  func.func @transform_0(%arg0: i32) -> (i32, i32) {
    %c0_i32 = arith.constant 0 : i32
    %c0_i32_0 = arith.constant 0 : i32
    return %arg0, %c0_i32 : i32, i32
  }
  func.func @transform_1(%arg0: i32) -> (i32, i32) {
    %c0_i32 = arith.constant 0 : i32
    %c0_i32_0 = arith.constant 0 : i32
    %c0_i32_1 = arith.constant 0 : i32
    return %c0_i32, %c0_i32_0 : i32, i32
  }
  func.func @transform_2(%arg0: i32) -> (i32, i32) {
    %c0_i32 = arith.constant 0 : i32
    %c0_i32_0 = arith.constant 0 : i32
    %c0_i32_1 = arith.constant 0 : i32
    return %c0_i32, %c0_i32_0 : i32, i32
  }
  func.func @transform_3(%arg0: i32) -> (i32, i32) {
    %c0_i32 = arith.constant 0 : i32
    %c0_i32_0 = arith.constant 0 : i32
    return %arg0, %c0_i32 : i32, i32
  }
}

</mosaic_0001>

<bundles_post_ra>
// kernel: conv_bn_relu.3
= control target key start
LH: loop header
LB: loop body
LE: loop exit
PB: predicated region body
PF: predicated region fallthrough
CT: control target
= control target key end

     0   :  { %s517_s12 = smov 0   ;;  %s733_s0 = inlined_call_operand.vmem [shape: f32[512,128], index: 0, kind: input, shape index: {}, may-alias: {0,3}]   ;;  %s734_s1 = inlined_call_operand.vmem [shape: f32[1,128], index: 1, kind: input, shape index: {}]   ;;  %s735_s2 = inlined_call_operand.vmem [shape: f32[1,128], index: 2, kind: input, shape index: {}]   ;;  %s736_s3 = inlined_call_operand.vmem [shape: f32[512,128], index: 3, kind: output, shape index: {}, may-alias: {0,3}]  }
   0x1 LB: > { %s468_s13 = sadd.s32 4294967295, %s495_s12   ;;  %p472_p0 = scmp.ge.s32.totalorder %s495_s12, 1  ;;  %s495_s12 = sphi %s517_s12, %s13_s12  }
   0x2   : > { %p138_p1 = scmp.lt.s32.totalorder %s495_s12, 3 }
   0x4   : > { %p139_p2 = pnand %p472_p0, %p138_p1 }
   0x5   : > { %s473_s14 = sshll.u32 (!%p139_p2), %s468_s13, 5 }
   0x6   : > { %142 = sbr.rel (%p139_p2) target bundleno = 59 (0x3b), region = 32  ;;  %p163_p3 = scmp.lt.s32.totalorder (!%p139_p2), %s473_s14, 63 }
   0xb   : > { %s738_s14 = smov (!%p163_p3, %s473_s14), 63  ;;  %v531_v0 = vld [vmem:[%s734_s1] ss:$0 sm:$0xff] }
   0xc   : > { %s474_s15 = sshll.u32 %s738_s14, 3  ;;  %v543_v1 = vld [vmem:[%s735_s2] ss:$0 sm:$0xff] }
   0xd   : > { %s538_s20 = scalar_lea.vmem %s733_s0, %s474_s15  ;;  %s580_s25 = scalar_lea.vmem %s736_s3, %s474_s15 }
   0xe   : > { %v174_v2 = vld [vmem:[%s538_s20] sm:$0xff]  ;;  %v175_v3 = vld [vmem:[%s538_s20 + $0x8] sm:$0xff]  ;;  %v176_v4 = vld [vmem:[%s538_s20 + $0x10] sm:$0xff] }
   0xf   : > { %v177_v5 = vld [vmem:[%s538_s20 + $0x18] sm:$0xff]  ;;  %v178_v6 = vld [vmem:[%s538_s20 + $0x20] sm:$0xff]  ;;  %v179_v7 = vld [vmem:[%s538_s20 + $0x28] sm:$0xff]  ;;  %v213_v8 = vmul.f32 %v531_v0, %v174_v2  ;;  %v214_v9 = vmul.f32 %v531_v0, %v175_v3  ;;  %v215_v10 = vmul.f32 %v531_v0, %v176_v4 }
  0x10   : > { %v180_v11 = vld [vmem:[%s538_s20 + $0x30] sm:$0xff]  ;;  %v181_v12 = vld [vmem:[%s538_s20 + $0x38] sm:$0xff]  ;;  %v182_v13 = vld [vmem:[%s538_s20 + $0x40] sm:$0xff]  ;;  %v216_v14 = vmul.f32 %v531_v0, %v177_v5  ;;  %v217_v15 = vmul.f32 %v531_v0, %v178_v6  ;;  %v218_v16 = vmul.f32 %v531_v0, %v179_v7 }
  0x11   : > { %v183_v17 = vld [vmem:[%s538_s20 + $0x48] sm:$0xff]  ;;  %v252_v18 = vadd.f32 %v543_v1, %v213_v8  ;;  %v253_v19 = vadd.f32 %v543_v1, %v214_v9  ;;  %v254_v20 = vadd.f32 %v543_v1, %v215_v10  ;;  %v219_v21 = vmul.f32 %v531_v0, %v180_v11  ;;  %v184_v29 = vld [vmem:[%s538_s20 + $0x50] sm:$0xff]  ;;  %v185_v36 = vld [vmem:[%s538_s20 + $0x58] sm:$0xff] }
  0x12   : > { %v255_v22 = vadd.f32 %v543_v1, %v216_v14  ;;  %v256_v23 = vadd.f32 %v543_v1, %v217_v15  ;;  %v257_v24 = vadd.f32 %v543_v1, %v218_v16  ;;  %v220_v25 = vmul.f32 %v531_v0, %v181_v12  ;;  %v186_v37 = vld [vmem:[%s538_s20 + $0x60] sm:$0xff]  ;;  %v187_v38 = vld [vmem:[%s538_s20 + $0x68] sm:$0xff]  ;;  %v188_v39 = vld [vmem:[%s538_s20 + $0x70] sm:$0xff] }
  0x13   : > { %vm284_vm0 = vcmp.ge.f32.partialorder %v252_v18, 0.0  ;;  %v316_v26 = vmul.f32 0.01, %v252_v18  ;;  %v258_v27 = vadd.f32 %v543_v1, %v219_v21  ;;  %v221_v28 = vmul.f32 %v531_v0, %v182_v13  ;;  %v189_v40 = vld [vmem:[%s538_s20 + $0x78] sm:$0xff]  ;;  %v588_v41 = vld [vmem:[%s538_s20 + $0x80] sm:$0xff]  ;;  %v591_v42 = vld [vmem:[%s538_s20 + $0x88] sm:$0xff] }
  0x14   : > { %vm285_vm1 = vcmp.ge.f32.partialorder %v253_v19, 0.0  ;;  %v317_v30 = vmul.f32 0.01, %v253_v19  ;;  %v259_v31 = vadd.f32 %v543_v1, %v220_v25  ;;  %v222_v32 = vmul.f32 %v531_v0, %v183_v17  ;;  %v594_v43 = vld [vmem:[%s538_s20 + $0x90] sm:$0xff]  ;;  %v597_v44 = vld [vmem:[%s538_s20 + $0x98] sm:$0xff]  ;;  %v600_v45 = vld [vmem:[%s538_s20 + $0xa0] sm:$0xff] }
  0x15   : > { %v348_v33 = vsel %vm284_vm0, %v252_v18, %v316_v26  ;;  %vm286_vm2 = vcmp.ge.f32.partialorder %v254_v20, 0.0  ;;  %v318_v34 = vmul.f32 0.01, %v254_v20  ;;  %v260_v35 = vadd.f32 %v543_v1, %v221_v28  ;;  %v603_v46 = vld [vmem:[%s538_s20 + $0xa8] sm:$0xff]  ;;  %v606_v47 = vld [vmem:[%s538_s20 + $0xb0] sm:$0xff]  ;;  %v609_v48 = vld [vmem:[%s538_s20 + $0xb8] sm:$0xff] }
  0x16   : > { %v612_v49 = vld [vmem:[%s538_s20 + $0xc0] sm:$0xff]  ;;  %v615_v50 = vld [vmem:[%s538_s20 + $0xc8] sm:$0xff]  ;;  %v618_v51 = vld [vmem:[%s538_s20 + $0xd0] sm:$0xff]  ;;  %v349_v52 = vsel %vm285_vm1, %v253_v19, %v317_v30  ;;  %vm287_vm3 = vcmp.ge.f32.partialorder %v255_v22, 0.0  ;;  %v319_v53 = vmul.f32 0.01, %v255_v22  ;;  %v261_v54 = vadd.f32 %v543_v1, %v222_v32 }
  0x17   : > { %v623_v55 = vld [vmem:[%s538_s20 + $0xd8] sm:$0xff]  ;;  %v626_v56 = vld [vmem:[%s538_s20 + $0xe0] sm:$0xff]  ;;  %v629_v57 = vld [vmem:[%s538_s20 + $0xe8] sm:$0xff]  ;;  %v350_v58 = vsel %vm286_vm2, %v254_v20, %v318_v34  ;;  %vm288_vm4 = vcmp.ge.f32.partialorder %v256_v23, 0.0  ;;  %v320_v59 = vmul.f32 0.01, %v256_v23  ;;  %v223_v60 = vmul.f32 %v531_v0, %v184_v29 }
  0x18   : > { %v634_v61 = vld [vmem:[%s538_s20 + $0xf0] sm:$0xff]  ;;  %v637_v62 = vld [vmem:[%s538_s20 + $0xf8] sm:$0xff]  ;;  %v351_v63 = vsel %vm287_vm3, %v255_v22, %v319_v53  ;;  %vm289_vm5 = vcmp.ge.f32.partialorder %v257_v24, 0.0  ;;  %v321_v2 = vmul.f32 0.01, %v257_v24  ;;  %vm290_vm6 = vcmp.ge.f32.partialorder %v258_v27, 0.0 }
  0x19   : > { %380 = vst [vmem:[%s580_s25] sm:$0xff] %v348_v33  ;;  %381 = vst [vmem:[%s580_s25 + $0x8] sm:$0xff] %v349_v52  ;;  %v352_v3 = vsel %vm288_vm4, %v256_v23, %v320_v59  ;;  %v322_v4 = vmul.f32 0.01, %v258_v27  ;;  %vm291_vm7 = vcmp.ge.f32.partialorder %v259_v31, 0.0  ;;  %v323_v5 = vmul.f32 0.01, %v259_v31 }
  0x1a   : > { %382 = vst [vmem:[%s580_s25 + $0x10] sm:$0xff] %v350_v58  ;;  %383 = vst [vmem:[%s580_s25 + $0x18] sm:$0xff] %v351_v63  ;;  %v353_v6 = vsel %vm289_vm5, %v257_v24, %v321_v2  ;;  %vm292_vm8 = vcmp.ge.f32.partialorder %v260_v35, 0.0  ;;  %v324_v7 = vmul.f32 0.01, %v260_v35  ;;  %vm293_vm9 = vcmp.ge.f32.partialorder %v261_v54, 0.0 }
  0x1b   : > { %384 = vst [vmem:[%s580_s25 + $0x20] sm:$0xff] %v352_v3  ;;  %385 = vst [vmem:[%s580_s25 + $0x28] sm:$0xff] %v353_v6  ;;  %v354_v8 = vsel %vm290_vm6, %v258_v27, %v322_v4  ;;  %v355_v9 = vsel %vm291_vm7, %v259_v31, %v323_v5  ;;  %v325_v10 = vmul.f32 0.01, %v261_v54  ;;  %v262_v11 = vadd.f32 %v543_v1, %v223_v60 }
  0x1c   : > { %386 = vst [vmem:[%s580_s25 + $0x30] sm:$0xff] %v354_v8  ;;  %387 = vst [vmem:[%s580_s25 + $0x38] sm:$0xff] %v355_v9  ;;  %v356_v12 = vsel %vm292_vm8, %v260_v35, %v324_v7  ;;  %v224_v13 = vmul.f32 %v531_v0, %v185_v36  ;;  %v225_v14 = vmul.f32 %v531_v0, %v186_v37 }
  0x1d   : > { %v226_v15 = vmul.f32 %v531_v0, %v187_v38  ;;  %388 = vst [vmem:[%s580_s25 + $0x40] sm:$0xff] %v356_v12  ;;  %v357_v16 = vsel %vm293_vm9, %v261_v54, %v325_v10  ;;  %vm294_vm10 = vcmp.ge.f32.partialorder %v262_v11, 0.0  ;;  %v326_v17 = vmul.f32 0.01, %v262_v11 }
  0x1e   : > { %v227_v18 = vmul.f32 %v531_v0, %v188_v39  ;;  %389 = vst [vmem:[%s580_s25 + $0x48] sm:$0xff] %v357_v16  ;;  %v263_v19 = vadd.f32 %v543_v1, %v224_v13  ;;  %v264_v20 = vadd.f32 %v543_v1, %v225_v14  ;;  %v228_v22 = vmul.f32 %v531_v0, %v189_v40 }
  0x1f   : > { %v265_v21 = vadd.f32 %v543_v1, %v226_v15  ;;  %v358_v23 = vsel %vm294_vm10, %v262_v11, %v326_v17  ;;  %v229_v25 = vmul.f32 %v531_v0, %v588_v41  ;;  %v230_v26 = vmul.f32 %v531_v0, %v591_v42 }
  0x20   : > { %v266_v24 = vadd.f32 %v543_v1, %v227_v18  ;;  %390 = vst [vmem:[%s580_s25 + $0x50] sm:$0xff] %v358_v23  ;;  %vm295_vm11 = vcmp.ge.f32.partialorder %v263_v19, 0.0  ;;  %v327_v27 = vmul.f32 0.01, %v263_v19  ;;  %vm296_vm12 = vcmp.ge.f32.partialorder %v264_v20, 0.0 }
  0x21   : > { %v328_v28 = vmul.f32 0.01, %v264_v20  ;;  %vm297_vm13 = vcmp.ge.f32.partialorder %v265_v21, 0.0  ;;  %v329_v29 = vmul.f32 0.01, %v265_v21  ;;  %v267_v33 = vadd.f32 %v543_v1, %v228_v22 }
  0x22   : > { %vm298_vm14 = vcmp.ge.f32.partialorder %v266_v24, 0.0  ;;  %v330_v30 = vmul.f32 0.01, %v266_v24  ;;  %v359_v31 = vsel %vm295_vm11, %v263_v19, %v327_v27  ;;  %v268_v34 = vadd.f32 %v543_v1, %v229_v25 }
  0x23   : > { %v360_v32 = vsel %vm296_vm12, %v264_v20, %v328_v28  ;;  %391 = vst [vmem:[%s580_s25 + $0x58] sm:$0xff] %v359_v31  ;;  %v361_v35 = vsel %vm297_vm13, %v265_v21, %v329_v29  ;;  %v269_v37 = vadd.f32 %v543_v1, %v230_v26  ;;  %v231_v38 = vmul.f32 %v531_v0, %v594_v43 }
  0x24   : > { %392 = vst [vmem:[%s580_s25 + $0x60] sm:$0xff] %v360_v32  ;;  %v362_v36 = vsel %vm298_vm14, %v266_v24, %v330_v30  ;;  %393 = vst [vmem:[%s580_s25 + $0x68] sm:$0xff] %v361_v35  ;;  %vm299_vm15 = vcmp.ge.f32.partialorder %v267_v33, 0.0  ;;  %v331_v39 = vmul.f32 0.01, %v267_v33  ;;  %vm300_vm0 = vcmp.ge.f32.partialorder %v268_v34, 0.0 }
  0x25   : > { %394 = vst [vmem:[%s580_s25 + $0x70] sm:$0xff] %v362_v36  ;;  %v332_v40 = vmul.f32 0.01, %v268_v34  ;;  %vm301_vm1 = vcmp.ge.f32.partialorder %v269_v37, 0.0  ;;  %v333_v41 = vmul.f32 0.01, %v269_v37  ;;  %v270_v42 = vadd.f32 %v543_v1, %v231_v38 }
  0x26   : > { %v232_v52 = vmul.f32 %v531_v0, %v597_v44  ;;  %v363_v53 = vsel %vm299_vm15, %v267_v33, %v331_v39  ;;  %v233_v43 = vmul.f32 %v531_v0, %v600_v45  ;;  %v234_v58 = vmul.f32 %v531_v0, %v603_v46 }
  0x27   : > { %v364_v54 = vsel %vm300_vm0, %v268_v34, %v332_v40  ;;  %395 = vst [vmem:[%s580_s25 + $0x78] sm:$0xff] %v363_v53  ;;  %v365_v59 = vsel %vm301_vm1, %v269_v37, %v333_v41  ;;  %vm302_vm2 = vcmp.ge.f32.partialorder %v270_v42, 0.0  ;;  %v334_v60 = vmul.f32 0.01, %v270_v42 }
  0x28   : > { %396 = vst [vmem:[%s580_s25 + $0x80] sm:$0xff] %v364_v54  ;;  %v271_v63 = vadd.f32 %v543_v1, %v232_v52  ;;  %397 = vst [vmem:[%s580_s25 + $0x88] sm:$0xff] %v365_v59  ;;  %v272_v2 = vadd.f32 %v543_v1, %v233_v43  ;;  %v273_v44 = vadd.f32 %v543_v1, %v234_v58 }
  0x29   : > { %v235_v45 = vmul.f32 %v531_v0, %v606_v47  ;;  %v236_v46 = vmul.f32 %v531_v0, %v609_v48  ;;  %v366_v3 = vsel %vm302_vm2, %v270_v42, %v334_v60  ;;  %v237_v5 = vmul.f32 %v531_v0, %v612_v49 }
  0x2a   : > { %vm303_vm3 = vcmp.ge.f32.partialorder %v271_v63, 0.0  ;;  %v335_v4 = vmul.f32 0.01, %v271_v63  ;;  %398 = vst [vmem:[%s580_s25 + $0x90] sm:$0xff] %v366_v3  ;;  %vm304_vm4 = vcmp.ge.f32.partialorder %v272_v2, 0.0  ;;  %vm305_vm5 = vcmp.ge.f32.partialorder %v273_v44, 0.0 }
  0x2b   : > { %v336_v6 = vmul.f32 0.01, %v272_v2  ;;  %v337_v7 = vmul.f32 0.01, %v273_v44  ;;  %v274_v9 = vadd.f32 %v543_v1, %v235_v45  ;;  %v275_v47 = vadd.f32 %v543_v1, %v236_v46 }
  0x2c   : > { %v367_v8 = vsel %vm303_vm3, %v271_v63, %v335_v4  ;;  %v276_v48 = vadd.f32 %v543_v1, %v237_v5  ;;  %v238_v12 = vmul.f32 %v531_v0, %v615_v50  ;;  %v239_v49 = vmul.f32 %v531_v0, %v618_v51 }
  0x2d   : > { %399 = vst [vmem:[%s580_s25 + $0x98] sm:$0xff] %v367_v8  ;;  %v368_v10 = vsel %vm304_vm4, %v272_v2, %v336_v6  ;;  %v369_v11 = vsel %vm305_vm5, %v273_v44, %v337_v7  ;;  %vm306_vm6 = vcmp.ge.f32.partialorder %v274_v9, 0.0  ;;  %v338_v13 = vmul.f32 0.01, %v274_v9 }
  0x2e   : > { %400 = vst [vmem:[%s580_s25 + $0xa0] sm:$0xff] %v368_v10  ;;  %401 = vst [vmem:[%s580_s25 + $0xa8] sm:$0xff] %v369_v11  ;;  %vm307_vm7 = vcmp.ge.f32.partialorder %v275_v47, 0.0  ;;  %v339_v14 = vmul.f32 0.01, %v275_v47  ;;  %vm308_vm8 = vcmp.ge.f32.partialorder %v276_v48, 0.0  ;;  %v277_v16 = vadd.f32 %v543_v1, %v238_v12 }
  0x2f   : > { %v340_v15 = vmul.f32 0.01, %v276_v48  ;;  %v278_v17 = vadd.f32 %v543_v1, %v239_v49  ;;  %v370_v18 = vsel %vm306_vm6, %v274_v9, %v338_v13  ;;  %v240_v19 = vmul.f32 %v531_v0, %v623_v55 }
  0x30   : > { %v371_v50 = vsel %vm307_vm7, %v275_v47, %v339_v14  ;;  %v241_v51 = vmul.f32 %v531_v0, %v626_v56  ;;  %402 = vst [vmem:[%s580_s25 + $0xb0] sm:$0xff] %v370_v18  ;;  %vm309_vm9 = vcmp.ge.f32.partialorder %v277_v16, 0.0  ;;  %v341_v21 = vmul.f32 0.01, %v277_v16 }
  0x31   : > { %403 = vst [vmem:[%s580_s25 + $0xb8] sm:$0xff] %v371_v50  ;;  %v372_v20 = vsel %vm308_vm8, %v276_v48, %v340_v15  ;;  %vm310_vm10 = vcmp.ge.f32.partialorder %v278_v17, 0.0  ;;  %v342_v22 = vmul.f32 0.01, %v278_v17  ;;  %v279_v23 = vadd.f32 %v543_v1, %v240_v19 }
  0x32   : > { %404 = vst [vmem:[%s580_s25 + $0xc0] sm:$0xff] %v372_v20  ;;  %v280_v24 = vadd.f32 %v543_v1, %v241_v51  ;;  %v242_v55 = vmul.f32 %v531_v0, %v629_v57  ;;  %v373_v25 = vsel %vm309_vm9, %v277_v16, %v341_v21  ;;  %v243_v56 = vmul.f32 %v531_v0, %v634_v61 }
  0x33   : > { %v244_v26 = vmul.f32 %v531_v0, %v637_v62  ;;  %405 = vst [vmem:[%s580_s25 + $0xc8] sm:$0xff] %v373_v25  ;;  %v374_v27 = vsel %vm310_vm10, %v278_v17, %v342_v22  ;;  %vm311_vm11 = vcmp.ge.f32.partialorder %v279_v23, 0.0  ;;  %v343_v28 = vmul.f32 0.01, %v279_v23 }
  0x34   : > { %vm312_vm12 = vcmp.ge.f32.partialorder %v280_v24, 0.0  ;;  %406 = vst [vmem:[%s580_s25 + $0xd0] sm:$0xff] %v374_v27  ;;  %v344_v29 = vmul.f32 0.01, %v280_v24  ;;  %v281_v30 = vadd.f32 %v543_v1, %v242_v55  ;;  %v282_v57 = vadd.f32 %v543_v1, %v243_v56 }
  0x35   : > { %v283_v31 = vadd.f32 %v543_v1, %v244_v26  ;;  %v375_v61 = vsel %vm311_vm11, %v279_v23, %v343_v28 }
  0x36   : > { %407 = vst [vmem:[%s580_s25 + $0xd8] sm:$0xff] %v375_v61  ;;  %v376_v0 = vsel %vm312_vm12, %v280_v24, %v344_v29  ;;  %vm313_vm13 = vcmp.ge.f32.partialorder %v281_v30, 0.0  ;;  %v345_v62 = vmul.f32 0.01, %v281_v30  ;;  %vm314_vm14 = vcmp.ge.f32.partialorder %v282_v57, 0.0 }
  0x37   : > { %408 = vst [vmem:[%s580_s25 + $0xe0] sm:$0xff] %v376_v0  ;;  %v346_v32 = vmul.f32 0.01, %v282_v57  ;;  %vm315_vm15 = vcmp.ge.f32.partialorder %v283_v31, 0.0  ;;  %v347_v33 = vmul.f32 0.01, %v283_v31 }
  0x38   : > { %v377_v34 = vsel %vm313_vm13, %v281_v30, %v345_v62 }
  0x39   : > { %409 = vst [vmem:[%s580_s25 + $0xe8] sm:$0xff] %v377_v34  ;;  %v378_v35 = vsel %vm314_vm14, %v282_v57, %v346_v32  ;;  %v379_v36 = vsel %vm315_vm15, %v283_v31, %v347_v33 }
  0x3a   : > { %410 = vst [vmem:[%s580_s25 + $0xf0] sm:$0xff] %v378_v35  ;;  %411 = vst [vmem:[%s580_s25 + $0xf8] sm:$0xff] %v379_v36 }
  0x3b PF: > { %s13_s12 = sadd.s32 1, %s495_s12  }
  0x3c   : > { %p10_p4 = scmp.ge.s32.totalorder %s13_s12, 4  }
  0x3e   :  { %12 = sbr.rel (!%p10_p4) target bundleno = 1 (0x1), region = 62 }

// kernel: conv_bn_relu.2
= control target key start
LH: loop header
LB: loop body
LE: loop exit
PB: predicated region body
PF: predicated region fallthrough
CT: control target
= control target key end

     0   :  { %s1383_s15 = smov 0   ;;  %s1554_s0 = inlined_call_operand.vmem [shape: f32[2,18,18,4], index: 0, kind: input, shape index: {}]   ;;  %s1555_s1 = inlined_call_operand.vmem [shape: f32[3,3,4,128], index: 1, kind: input, shape index: {}]   ;;  %s1556_s2 = inlined_call_operand.vmem [shape: f32[2,16,16,128], index: 2, kind: output, shape index: {0}]   ;;  %s1557_s3 = inlined_call_operand.vmem [shape: f32[2,1,128], index: 3, kind: output, shape index: {1}]   ;;  %s1558_s4 = inlined_call_operand.vmem [shape: f32[2,1,128], index: 4, kind: output, shape index: {2}]  }
   0x1 LB: > { %s1198_s16 = sadd.s32 4294967295, %s1351_s15   ;;  %p1202_p0 = scmp.ge.s32.totalorder %s1351_s15, 1  ;;  %s1351_s15 = sphi %s1383_s15, %s15_s15  }
   0x2   : > { %p167_p1 = scmp.lt.s32.totalorder %s1351_s15, 3 }
   0x4   : > { %p168_p2 = pnand %p1202_p0, %p167_p1 }
   0x5   : > { %p199_p3 = scmp.lt.s32.totalorder (!%p168_p2), %s1198_s16, 1  ;;  %s1458_s25 = smov (!%p168_p2), 0  }
   0x6   : > { %171 = sbr.rel (%p168_p2) target bundleno = 257 (0x101), region = 28 }
   0xb   : > { %v1394_v0 = vld [vmem:[%s1555_s1] sm:$0xf]  ;;  %v1399_v1 = vld [vmem:[%s1555_s1 + $0x4] sm:$0xf]  ;;  %v1404_v2 = vld [vmem:[%s1555_s1 + $0x8] sm:$0xf] }
   0xc   : > { %v1409_v3 = vld [vmem:[%s1555_s1 + $0xc] sm:$0xf]  ;;  %v1414_v4 = vld [vmem:[%s1555_s1 + $0x10] sm:$0xf]  ;;  %s1560_s16 = smov (!%p199_p3, %s1198_s16), 1  ;;  %v1357_v9 = vmov 0.0  }
   0xd   : > { %v1419_v5 = vld [vmem:[%s1555_s1 + $0x14] sm:$0xf]  ;;  %v1424_v6 = vld [vmem:[%s1555_s1 + $0x18] sm:$0xf]  ;;  %v1429_v7 = vld [vmem:[%s1555_s1 + $0x1c] sm:$0xf]  ;;  %s1444_s18 = scalar_lea.vmem %s1557_s3, %s1560_s16  ;;  %s1455_s24 = scalar_lea.vmem %s1558_s4, %s1560_s16 }
   0xe   : > { %v1434_v8 = vld [vmem:[%s1555_s1 + $0x20] sm:$0xf]  ;;  %s1323_s9 = smul.u32 432, %s1560_s16  ;;  %s1250_s10 = sshll.u32 %s1560_s16, 8  ;;  %232 = vst [vmem:[%s1444_s18] sm:$0x1] %v1357_v9  ;;  %233 = vst [vmem:[%s1455_s24] sm:$0x1] %v1357_v9 }
   0xf   : > { %s1439_s13 = scalar_lea.vmem %s1556_s2, %s1250_s10 }
  0x10   : > { %s1449_s21 = scalar_lea.vmem %s1554_s0, %s1323_s9 }
  0x11 LB: >> { %vm259_vm0 = vcmask 1043456   ;;  %s240_s16 = smul.u32 24, %s1355_s25  ;;  %vm254_vm1 = vcmask 31744   ;;  %vm248_vm2 = vcmask 1046528   ;;  %vm420_vm3 = vcmask 1045504   ;;  %s1247_s27 = sshll.u32 %s1355_s25, 4  ;;  %s1355_s25 = sphi %s1458_s25, %s239_s25  }
  0x12   : >> { %1278 = vmatprep.subr.msk.mxu0 %vm259_vm0, %v1399_v1  ;;  %1283 = vmatprep.subr.msk.mxu1 %vm259_vm0, %v1394_v0  ;;  %s1053_s28 = scalar_lea.vmem %s1439_s13, %s1247_s27  ;;  %s239_s25 = sadd.s32 1, %s1355_s25  }
  0x13   : >> { %1279 = vmatpush3.msk.msra.mxu0 %vm259_vm0, %v1399_v1  ;;  %1284 = vmatpush3.msk.msra.mxu1 %vm259_vm0, %v1394_v0  ;;  %s1477_s26 = scalar_lea.vmem %s1449_s21, %s240_s16  ;;  %p236_p4 = scmp.ge.s32.totalorder %s239_s25, 16  }
  0x14   : >> { %1288 = vmatprep.subr.msk.mxu0 %vm259_vm0, %v1404_v2  ;;  %1293 = vmatprep.subr.msk.mxu1 %vm259_vm0, %v1409_v3  ;;  %v242_v10 = vld [vmem:[%s1477_s26] sm:$0xff]  ;;  %v243_v11 = vld [vmem:[%s1477_s26 + $0x8] sm:$0xff]  ;;  %v244_v12 = vld [vmem:[%s1477_s26 + $0x10] sm:$0x3] }
  0x15   : >> { %v249_v13 = vrot.slane %v242_v10, 1  ;;  %v250_v14 = vrot.slane %v243_v11, 1  ;;  %1285 = vmatprep.mubr.msk.f32.mxu1 %vm254_vm1, %v242_v10  ;;  %v252_v15 = vrot.slane %v244_v12, 1  ;;  %v424_v16 = vrot.slane %v244_v12, 2  ;;  %v1223_v17 = vld [vmem:[%s1477_s26 + $0x18] sm:$0xff]  ;;  %v1224_v18 = vld [vmem:[%s1477_s26 + $0x20] sm:$0xff] }
  0x16   : >> { %1286 = vmatmul.mubr.msk.f32.vlgmr.msra.gmra.mxu1 %vm254_vm1, %v243_v11  ;;  %v421_v19 = vrot.slane %v242_v10, 2  ;;  %v422_v20 = vrot.slane %v243_v11, 2  ;;  %v603_v21 = vrot.slane %v1223_v17, 1  ;;  %v692_v22 = vrot.slane %v1223_v17, 2  ;;  %v1225_v23 = vld [vmem:[%s1477_s26 + $0x28] sm:$0x3] }
  0x17   : >> { %v251_v24 = vsel %vm248_vm2, %v249_v13, %v250_v14  ;;  %v253_v25 = vsel %vm248_vm2, %v250_v14, %v252_v15  ;;  %1294 = vmatpush3.msk.msra.mxu1 %vm259_vm0, %v1409_v3  ;;  %1295 = vmatprep.mubr.msk.f32.mxu1 %vm254_vm1, %v1223_v17  ;;  %v604_v26 = vrot.slane %v1224_v18, 1  ;;  %v693_v27 = vrot.slane %v1224_v18, 2  ;;  %v1235_v28 = vld [vmem:[%s1477_s26 + $0x30] sm:$0xff]  ;;  %v1236_v29 = vld [vmem:[%s1477_s26 + $0x38] sm:$0xff]  ;;  %v1237_v34 = vld [vmem:[%s1477_s26 + $0x40] sm:$0x3] }
  0x18   : >> { %1280 = vmatprep.mubr.msk.f32.mxu0 %vm254_vm1, %v251_v24  ;;  %v423_v30 = vsel %vm420_vm3, %v421_v19, %v422_v20  ;;  %1303 = vmatprep.subr.msk.mxu1 %vm259_vm0, %v1419_v5  ;;  %v695_v31 = vrot.slane %v1225_v23, 2  ;;  %v874_v33 = vrot.slane %v1235_v28, 1  ;;  %v425_v35 = vsel %vm420_vm3, %v422_v20, %v424_v16 }
  0x19   : >> { %1281 = vmatmul.mubr.msk.f32.vlgmr.msra.gmra.mxu0 %vm254_vm1, %v253_v25  ;;  %v694_v32 = vsel %vm420_vm3, %v692_v22, %v693_v27  ;;  %v606_v36 = vrot.slane %v1225_v23, 1  ;;  %v875_v37 = vrot.slane %v1236_v29, 1  ;;  %v605_v38 = vsel %vm248_vm2, %v603_v21, %v604_v26 }
  0x1a   : >> { %1289 = vmatpush3.msk.msra.mxu0 %vm259_vm0, %v1404_v2  ;;  %1290 = vmatprep.mubr.msk.f32.mxu0 %vm254_vm1, %v423_v30  ;;  %v696_v39 = vsel %vm420_vm3, %v693_v27, %v695_v31  ;;  %v877_v40 = vrot.slane %v1237_v34, 1  ;;  %v963_v43 = vrot.slane %v1235_v28, 2  ;;  %v964_v44 = vrot.slane %v1236_v29, 2 }
  0x1b   : >> { %1298 = vmatprep.subr.msk.mxu0 %vm259_vm0, %v1414_v4  ;;  %1296 = vmatmul.mubr.msk.f32.vlgmr.msra.gmra.mxu1 %vm254_vm1, %v1224_v18  ;;  %v876_v41 = vsel %vm248_vm2, %v874_v33, %v875_v37  ;;  %v607_v42 = vsel %vm248_vm2, %v604_v26, %v606_v36  ;;  %v966_v46 = vrot.slane %v1237_v34, 2 }
  0x1c   : >> { %1304 = vmatpush3.msk.msra.mxu1 %vm259_vm0, %v1419_v5  ;;  %1305 = vmatprep.mubr.msk.f32.mxu1 %vm254_vm1, %v694_v32  ;;  %v878_v45 = vsel %vm248_vm2, %v875_v37, %v877_v40  ;;  %v965_v47 = vsel %vm420_vm3, %v963_v43, %v964_v44 }
  0x1d   : >> { %1291 = vmatmul.mubr.msk.f32.vlgmr.msra.gmra.mxu0 %vm254_vm1, %v425_v35  ;;  %1313 = vmatprep.subr.msk.mxu1 %vm259_vm0, %v1429_v7  ;;  %v967_v48 = vsel %vm420_vm3, %v964_v44, %v966_v46  ;;  %v1066_v44 = vld [vmem:[%s1455_s24] sm:$0x1] }
  0x1e   : >> { %1299 = vmatpush3.msk.msra.mxu0 %vm259_vm0, %v1414_v4  ;;  %1300 = vmatprep.mubr.msk.f32.mxu0 %vm254_vm1, %v605_v38 }
  0x1f   : >> { %1308 = vmatprep.subr.msk.mxu0 %vm259_vm0, %v1424_v6  ;;  %1306 = vmatmul.mubr.msk.f32.vlgmr.msra.gmra.mxu1 %vm254_vm1, %v696_v39 }
  0x20   : >> { %1314 = vmatpush3.msk.msra.mxu1 %vm259_vm0, %v1429_v7  ;;  %1315 = vmatprep.mubr.msk.f32.mxu1 %vm254_vm1, %v876_v41  ;;  %v1056_v41 = vld [vmem:[%s1444_s18] sm:$0x1] }
  0x21   : >> { %1301 = vmatmul.mubr.msk.f32.vlgmr.msra.gmra.mxu0 %vm254_vm1, %v607_v42 }
  0x22   : >> { %1309 = vmatpush3.msk.msra.mxu0 %vm259_vm0, %v1424_v6  ;;  %1310 = vmatprep.mubr.msk.f32.mxu0 %vm254_vm1, %v1235_v28 }
  0x23   : >> { %1318 = vmatprep.subr.msk.mxu0 %vm259_vm0, %v1434_v8  ;;  %1316 = vmatmul.mubr.msk.f32.vlgmr.msra.gmra.mxu1 %vm254_vm1, %v878_v45 }
  0x25   : >> { %1311 = vmatmul.mubr.msk.f32.vlgmr.msra.gmra.mxu0 %vm254_vm1, %v1236_v29 }
  0x26   : >> { %1319 = vmatpush3.msk.msra.mxu0 %vm259_vm0, %v1434_v8  ;;  %1320 = vmatprep.mubr.msk.f32.mxu0 %vm254_vm1, %v965_v47 }
  0x29   : >> { %1321 = vmatmul.mubr.msk.f32.vlgmr.msra.gmra.mxu0 %vm254_vm1, %v967_v48 }
  0xd6   : >> { %v1287_v49 = vpop.f32.mrf.mxu1 }
  0xd8   : >> { %v411_v50 = vpop.f32.mrf.mxu1 }
  0xd9   : >> { %v1282_v51 = vpop.f32.mrf.mxu0 }
  0xda   : >> { %v417_v54 = vadd.f32 %v1287_v49, %v1282_v51 }
  0xdb   : >> { %v329_v52 = vpop.f32.mrf.mxu0  ;;  %v1297_v53 = vpop.f32.mrf.mxu1 }
  0xdc   : >> { %v412_v57 = vadd.f32 %v411_v50, %v329_v52 }
  0xdd   : >> { %v1292_v55 = vpop.f32.mrf.mxu0  ;;  %v591_v56 = vpop.f32.mrf.mxu1 }
  0xde   : >> { %v509_v58 = vadd.f32 %v1292_v55, %v417_v54 }
  0xdf   : >> { %v499_v59 = vpop.f32.mrf.mxu0  ;;  %v1307_v60 = vpop.f32.mrf.mxu1 }
  0xe0   : >> { %v601_v61 = vadd.f32 %v1297_v53, %v509_v58  ;;  %v508_v62 = vadd.f32 %v499_v59, %v412_v57 }
  0xe1   : >> { %v1302_v63 = vpop.f32.mrf.mxu0  ;;  %v770_v9 = vpop.f32.mrf.mxu1 }
  0xe2   : >> { %v600_v10 = vadd.f32 %v591_v56, %v508_v62  ;;  %v691_v11 = vadd.f32 %v1302_v63, %v601_v61 }
  0xe3   : >> { %v681_v12 = vpop.f32.mrf.mxu0  ;;  %v1317_v16 = vpop.f32.mrf.mxu1 }
  0xe4   : >> { %v780_v13 = vadd.f32 %v1307_v60, %v691_v11  ;;  %v690_v14 = vadd.f32 %v681_v12, %v600_v10 }
  0xe5   : >> { %v1312_v15 = vpop.f32.mrf.mxu0  ;;  %v952_v22 = vpop.f32.mrf.mxu1 }
  0xe6   : >> { %v779_v17 = vadd.f32 %v770_v9, %v690_v14  ;;  %v872_v18 = vadd.f32 %v1312_v15, %v780_v13 }
  0xe7   : >> { %v862_v19 = vpop.f32.mrf.mxu0 }
  0xe8   : >> { %v962_v20 = vadd.f32 %v1317_v16, %v872_v18  ;;  %v871_v21 = vadd.f32 %v862_v19, %v779_v17 }
  0xe9   : >> { %v1322_v23 = vpop.f32.mrf.mxu0 }
  0xea   : >> { %v961_v24 = vadd.f32 %v952_v22, %v871_v21  ;;  %v1051_v25 = vadd.f32 %v1322_v23, %v962_v20 }
  0xeb   : >> { %v1041_v26 = vpop.f32.mrf.mxu0 }
  0xec   : >> { %1055 = vst [vmem:[%s1053_s28 + $0x8] sm:$0xff] %v1051_v25  ;;  %v1050_v27 = vadd.f32 %v1041_v26, %v961_v24  ;;  %v1068_v28 = vmul.f32 %v1051_v25, %v1051_v25 }
  0xee   : >> { %1054 = vst [vmem:[%s1053_s28] sm:$0xff] %v1050_v27  ;;  %v1057_v29 = vadd.f32 %v1051_v25, %v1050_v27  ;;  %v1067_v30 = vmul.f32 %v1050_v27, %v1050_v27 }
  0xf0   : >> { %v1058_v31 = vrot.slane %v1057_v29, 4  ;;  %v1069_v32 = vadd.f32 %v1068_v28, %v1067_v30 }
  0xf2   : >> { %v1059_v33 = vadd.f32 %v1058_v31, %v1057_v29  ;;  %v1070_v34 = vrot.slane %v1069_v32, 4 }
  0xf4   : >> { %v1060_v35 = vrot.slane %v1059_v33, 2  ;;  %v1071_v36 = vadd.f32 %v1070_v34, %v1069_v32 }
  0xf6   : >> { %v1061_v37 = vadd.f32 %v1060_v35, %v1059_v33  ;;  %v1072_v38 = vrot.slane %v1071_v36, 2 }
  0xf8   : >> { %v1062_v39 = vrot.slane %v1061_v37, 1  ;;  %v1073_v40 = vadd.f32 %v1072_v38, %v1071_v36 }
  0xfa   : >> { %v1063_v42 = vadd.f32 %v1062_v39, %v1061_v37  ;;  %v1074_v43 = vrot.slane %v1073_v40, 1 }
  0xfc   : >> { %v1064_v45 = vadd.f32 %v1063_v42, %v1056_v41  ;;  %v1075_v46 = vadd.f32 %v1074_v43, %v1073_v40  ;;  %238 = sbr.rel (!%p236_p4) target bundleno = 17 (0x11), region = 101 }
  0xfe   : >> { %1065 = vst [vmem:[%s1444_s18] sm:$0x1] %v1064_v45  ;;  %v1076_v47 = vadd.f32 %v1075_v46, %v1066_v44 }
 0x100   : >> { %1077 = vst [vmem:[%s1455_s24] sm:$0x1] %v1076_v47 }
 0x101 PF: > { %s15_s15 = sadd.s32 1, %s1351_s15  }
 0x102   : > { %p12_p5 = scmp.ge.s32.totalorder %s15_s15, 4  }
 0x104   :  { %14 = sbr.rel (!%p12_p5) target bundleno = 1 (0x1), region = 112 }

</bundles_post_ra>
